<compile_context>
chip_gen: v5e
topology: v5e:2x2
jax: 0.10.0
libtpu: 0.0.40
codegen_flags: <defaults>
</compile_context>

<pallas_src>
import functools
import math

import jax
import jax.numpy as jnp
from jax.experimental import pallas as pl
from jax.experimental.pallas import tpu as pltpu

LN_EPS = 1e-5       # nn.LayerNorm default
NEG_INF = -1e9      # masked_fill value used by the PyTorch module
BF16 = jnp.bfloat16
F32 = jnp.float32


# ----------------------------------------------------------------------------
# Small helpers
# ----------------------------------------------------------------------------
def _nbytes(shape, dtype):
    return math.prod(shape) * jnp.dtype(dtype).itemsize


def _pick_tile(total, target, align=8):
    """Largest divisor of `total` that is <= target and aligned, else `total`."""
    if total <= target:
        return total
    for t in range(min(target, total), 0, -1):
        if total % t == 0 and t % align == 0:
            return t
    return total


def _mosaic_params(semantics, streamed=0, resident=0, temps=0):
    # streamed blocks are double-buffered; resident weights/scratch counted once.
    est = 2 * streamed + resident + temps + (4 << 20)
    limit = int(min(48 << 20, max(16 << 20, est)))   # <=48MiB: safe on v7x too
    return pltpu.CompilerParams(dimension_semantics=semantics,
                                vmem_limit_bytes=limit)


def _layernorm(x, w, b):
    mu = jnp.mean(x, axis=-1, keepdims=True)
    var = jnp.mean((x - mu) ** 2, axis=-1, keepdims=True)
    return (x - mu) * jax.lax.rsqrt(var + LN_EPS) * w + b


# ----------------------------------------------------------------------------
# Kernel 1: embedding projection (folded double-orthogonal) + positional enc.
#   out = embed @ P + pos,   P = transform.T @ projection_transform (folded)
# ----------------------------------------------------------------------------
def _embed_kernel(e_ref, p_ref, pos_ref, o_ref):
    o_ref[...] = jnp.dot(e_ref[...].astype(BF16), p_ref[...],
                         preferred_element_type=F32) + pos_ref[...]


def embed_proj(embed, p_bf16, pos):
    B, S, D = embed.shape
    ts = _pick_tile(S, 256)
    streamed = 3 * _nbytes((ts, D), F32)
    resident = _nbytes((D, D), BF16)
    return pl.pallas_call(
        _embed_kernel,
        out_shape=jax.ShapeDtypeStruct((B, S, D), F32),
        grid=(B, S // ts),
        in_specs=[
            pl.BlockSpec((None, ts, D), lambda b, i: (b, i, 0)),
            pl.BlockSpec((D, D), lambda b, i: (0, 0)),
            pl.BlockSpec((ts, D), lambda b, i: (i, 0)),
        ],
        out_specs=pl.BlockSpec((None, ts, D), lambda b, i: (b, i, 0)),
        compiler_params=_mosaic_params(("parallel", "parallel"),
                                       streamed, resident),
    )(embed, p_bf16, pos)


# ----------------------------------------------------------------------------
# Kernel 2: one transformer block (causal MHA + LN + FFN + LN), query-tiled.
#   grid = (batch, query-tile).  K/V for the whole sequence are computed once
#   per batch element (qi == 0) into bf16 VMEM scratch and reused for every
#   query tile; only (H, tq, S) score tensors are ever live.
# ----------------------------------------------------------------------------
def _block_kernel(x_ref, bias_ref, wq_ref, bq_ref, wkv_ref, bkv_ref,
                  wo_ref, bo_ref, ln1w_ref, ln1b_ref, w1_ref, b1_ref,
                  w2_ref, b2_ref, ln2w_ref, ln2b_ref, o_ref,
                  k_sc, v_sc, *, n_heads, q_tile):
    seq, d_model = x_ref.shape
    dk = d_model // n_heads
    qi = pl.program_id(1)

    @pl.when(qi == 0)
    def _():
        kv = jnp.dot(x_ref[...].astype(BF16), wkv_ref[...],
                     preferred_element_type=F32) + bkv_ref[...]        # (S, 2D)
        kv = jnp.transpose(kv.reshape(seq, 2 * n_heads, dk), (1, 0, 2))
        k_sc[...] = kv[:n_heads].astype(BF16)                          # (H,S,dk)
        v_sc[...] = kv[n_heads:].astype(BF16)

    row0 = pl.multiple_of(qi * q_tile, q_tile)
    xq = x_ref[pl.ds(row0, q_tile), :]                                 # (tq, D)

    # Q projection (1/sqrt(dk) already folded into wq/bq at prep time).
    q = jnp.dot(xq.astype(BF16), wq_ref[...],
                preferred_element_type=F32) + bq_ref[...]
    q = jnp.transpose(q.reshape(q_tile, n_heads, dk), (1, 0, 2))       # (H,tq,dk)

    s = jnp.einsum("hqd,hkd->hqk", q.astype(BF16), k_sc[...],
                   preferred_element_type=F32)                         # (H,tq,S)
    s = s + bias_ref[...][None, :, :]                                  # causal bias

    # softmax in f32; the normalization is applied to ctx (tq*dk elems per head
    # instead of tq*S) via an approx EUP reciprocal.
    m = jnp.max(s, axis=-1, keepdims=True)
    p = jnp.exp(s - m)
    denom = jnp.sum(p, axis=-1, keepdims=True)                         # (H,tq,1)
    # attention dropout: eval mode -> identity
    ctx = jnp.einsum("hqk,hkd->hqd", p.astype(BF16), v_sc[...],
                     preferred_element_type=F32)                       # (H,tq,dk)
    ctx = ctx * pl.reciprocal(denom, approx=True)
    ctx = jnp.transpose(ctx, (1, 0, 2)).reshape(q_tile, d_model)       # (tq, D)

    attn = jnp.dot(ctx.astype(BF16), wo_ref[...],
                   preferred_element_type=F32) + bo_ref[...]
    xr = _layernorm(xq + attn, ln1w_ref[...], ln1b_ref[...])

    h1 = jnp.maximum(
        jnp.dot(xr.astype(BF16), w1_ref[...], preferred_element_type=F32)
        + b1_ref[...], 0.0)
    ff = jnp.dot(h1.astype(BF16), w2_ref[...],
                 preferred_element_type=F32) + b2_ref[...]
    o_ref[...] = _layernorm(xr + ff, ln2w_ref[...], ln2b_ref[...])


def transformer_block(x, bias, lp, n_heads):
    B, S, D = x.shape
    dk = D // n_heads
    d_ff = lp["w1"].shape[1]
    tq = _pick_tile(S, 256)

    weights = [lp["wq"], lp["bq"], lp["wkv"], lp["bkv"], lp["wo"], lp["bo"],
               lp["ln1w"], lp["ln1b"], lp["w1"], lp["b1"], lp["w2"], lp["b2"],
               lp["ln2w"], lp["ln2b"]]

    in_specs = [pl.BlockSpec((None, S, D), lambda b, q: (b, 0, 0)),
                pl.BlockSpec((tq, S), lambda b, q: (q, 0))]
    streamed = _nbytes((tq, D), F32) + _nbytes((tq, S), F32)
    resident = _nbytes((S, D), F32) + 2 * _nbytes((n_heads, S, dk), BF16)
    temps = (_nbytes((S, 2 * D), F32)                       # kv at qi == 0
             + 3 * n_heads * _nbytes((tq, S), F32)          # s, p (+ slack)
             + _nbytes((tq, d_ff), F32)
             + 4 * _nbytes((tq, D), F32))
    for w in weights:
        # TODO(synk): pipeline_mode=pl.Buffered(1) for these constant-index
        # weight blocks once verified on the deployed jax version.
        in_specs.append(pl.BlockSpec(w.shape, lambda b, q: (0, 0)))
        resident += _nbytes(w.shape, w.dtype)

    return pl.pallas_call(
        functools.partial(_block_kernel, n_heads=n_heads, q_tile=tq),
        out_shape=jax.ShapeDtypeStruct((B, S, D), F32),
        grid=(B, S // tq),
        in_specs=in_specs,
        out_specs=pl.BlockSpec((None, tq, D), lambda b, q: (b, q, 0)),
        scratch_shapes=[pltpu.VMEM((n_heads, S, dk), BF16),
                        pltpu.VMEM((n_heads, S, dk), BF16)],
        compiler_params=_mosaic_params(("parallel", "arbitrary"),
                                       streamed, resident, temps),
    )(x, bias, *weights)


# ----------------------------------------------------------------------------
# Kernel 3: final LayerNorm + output projection (row-tiled over B*S rows).
#   pred  = LN(x) @ Wout + bout              (returned, f32)
#   pred2 = pred @ P.T                       (bf16, feeds the logits kernel)
# ----------------------------------------------------------------------------
def _pred_kernel(x_ref, lnw_ref, lnb_ref, wout_ref, bout_ref, pt_ref,
                 pred_ref, pred2_ref):
    xn = _layernorm(x_ref[...], lnw_ref[...], lnb_ref[...])
    pred = jnp.dot(xn.astype(BF16), wout_ref[...],
                   preferred_element_type=F32) + bout_ref[...]
    pred_ref[...] = pred
    pred2_ref[...] = jnp.dot(pred.astype(BF16), pt_ref[...],
                             preferred_element_type=F32).astype(BF16)


def pred_head(x_rows, lnw, lnb, wout_bf16, bout, pt_bf16):
    R, D = x_rows.shape
    tr = _pick_tile(R, 256)
    streamed = 2 * _nbytes((tr, D), F32) + _nbytes((tr, D), BF16)
    resident = 2 * _nbytes((D, D), BF16) + 3 * _nbytes((1, D), F32)
    temps = 2 * _nbytes((tr, D), F32)
    return pl.pallas_call(
        _pred_kernel,
        out_shape=(jax.ShapeDtypeStruct((R, D), F32),
                   jax.ShapeDtypeStruct((R, D), BF16)),
        grid=(R // tr,),
        in_specs=[
            pl.BlockSpec((tr, D), lambda i: (i, 0)),
            pl.BlockSpec((1, D), lambda i: (0, 0)),
            pl.BlockSpec((1, D), lambda i: (0, 0)),
            pl.BlockSpec((D, D), lambda i: (0, 0)),
            pl.BlockSpec((1, D), lambda i: (0, 0)),
            pl.BlockSpec((D, D), lambda i: (0, 0)),
        ],
        out_specs=(pl.BlockSpec((tr, D), lambda i: (i, 0)),
                   pl.BlockSpec((tr, D), lambda i: (i, 0))),
        compiler_params=_mosaic_params(("parallel",), streamed, resident, temps),
    )(x_rows, lnw, lnb, wout_bf16, bout, pt_bf16)


# ----------------------------------------------------------------------------
# Kernel 4: logits = pred2 @ emb.T, tiled (vocab-outer, row-inner), both
# parallel.  The embedding tile stays resident across the inner row loop; the
# contraction uses the transposed-B form natively (no glue transpose of emb).
# ----------------------------------------------------------------------------
def _logits_kernel(p2_ref, emb_ref, o_ref):
    o_ref[...] = jax.lax.dot_general(
        p2_ref[...], emb_ref[...], (((1,), (1,)), ((), ())),
        preferred_element_type=F32)


def logits_head(pred2, emb_bf16, vocab_tile=1024, row_tile=256):
    R, D = pred2.shape
    V = emb_bf16.shape[0]
    tv = _pick_tile(V, vocab_tile, align=128)
    tr = _pick_tile(R, row_tile)
    streamed = (_nbytes((tr, D), BF16) + _nbytes((tv, D), BF16)
                + _nbytes((tr, tv), F32))
    return pl.pallas_call(
        _logits_kernel,
        out_shape=jax.ShapeDtypeStruct((R, V), F32),
        grid=(V // tv, R // tr),
        in_specs=[
            pl.BlockSpec((tr, D), lambda v, r: (r, 0)),
            pl.BlockSpec((tv, D), lambda v, r: (v, 0)),
        ],
        out_specs=pl.BlockSpec((tr, tv), lambda v, r: (r, v)),
        compiler_params=_mosaic_params(("parallel", "parallel"), streamed),
    )(pred2, emb_bf16)


# ----------------------------------------------------------------------------
# Parameter construction (deterministic, synthetic) + one-time preparation
# ----------------------------------------------------------------------------
def _linear(key, fan_in, fan_out):
    # PyTorch nn.Linear default init range; weight stored pre-transposed (in, out)
    k1, k2 = jax.random.split(key)
    bound = 1.0 / math.sqrt(fan_in)
    w = jax.random.uniform(k1, (fan_in, fan_out), F32, -bound, bound)
    b = jax.random.uniform(k2, (1, fan_out), F32, -bound, bound)
    return w, b


def _orthogonal(key, n):
    q, _ = jnp.linalg.qr(jax.random.normal(key, (n, n), F32))
    return q


def positional_encoding(max_seq_len, d_model):
    position = jnp.arange(max_seq_len, dtype=F32)[:, None]
    div_term = jnp.exp(jnp.arange(0, d_model, 2, dtype=F32)
                       * (-math.log(10000.0) / d_model))
    pe = jnp.zeros((max_seq_len, d_model), F32)
    pe = pe.at[:, 0::2].set(jnp.sin(position * div_term))
    pe = pe.at[:, 1::2].set(jnp.cos(position * div_term))
    return pe


def init_params(key, vocab_size, d_model, n_heads, n_layers, d_ff, max_seq_len):
    keys = jax.random.split(key, 5 + n_layers)
    params = {
        "n_heads": n_heads,
        "emb": jax.random.normal(keys[0], (vocab_size, d_model), F32),
        "orthogonal_matrix": _orthogonal(keys[1], d_model),
        "projection_orthogonal_matrix": _orthogonal(keys[2], d_model),
        "transform_weight": jnp.eye(d_model, dtype=F32),
        "projection_transform_weight": jnp.eye(d_model, dtype=F32),
        "pe": positional_encoding(max_seq_len, d_model),
        "final_ln_w": jnp.ones((1, d_model), F32),
        "final_ln_b": jnp.zeros((1, d_model), F32),
    }
    params["wout_T"], params["bout"] = _linear(keys[3], d_model, d_model)

    layers = []
    for li in range(n_layers):
        lk = jax.random.split(keys[5 + li], 6)
        wq, bq = _linear(lk[0], d_model, d_model)
        wk, bk = _linear(lk[1], d_model, d_model)
        wv, bv = _linear(lk[2], d_model, d_model)
        wo, bo = _linear(lk[3], d_model, d_model)
        w1, b1 = _linear(lk[4], d_model, d_ff)
        w2, b2 = _linear(lk[5], d_ff, d_model)
        layers.append({
            "wq": wq, "bq": bq, "wk": wk, "bk": bk, "wv": wv, "bv": bv,
            "wo": wo, "bo": bo,
            "ln1w": jnp.ones((1, d_model), F32),
            "ln1b": jnp.zeros((1, d_model), F32),
            "w1": w1, "b1": b1, "w2": w2, "b2": b2,
            "ln2w": jnp.ones((1, d_model), F32),
            "ln2b": jnp.zeros((1, d_model), F32),
        })
    params["layers"] = layers
    return params


def prepare_params(params):
    """One-time weight prep: fold projections & attention scale, concat K/V,
    cast MXU operands to bf16.  Run once, outside forward()."""
    D = params["emb"].shape[1]
    n_heads = params["n_heads"]
    scale = 1.0 / math.sqrt(D // n_heads)
    transform = params["transform_weight"] @ params["orthogonal_matrix"]
    proj_transform = (params["projection_transform_weight"]
                      @ params["projection_orthogonal_matrix"])
    P = transform.T @ proj_transform      # folded double-orthogonal projection

    prep = {
        "n_heads": n_heads,
        "emb": params["emb"],
        "emb_bf16": params["emb"].astype(BF16),
        "P_bf16": P.astype(BF16),
        "PT_bf16": P.T.astype(BF16),
        "pe": params["pe"],
        "final_ln_w": params["final_ln_w"],
        "final_ln_b": params["final_ln_b"],
        "wout_bf16": params["wout_T"].astype(BF16),
        "bout": params["bout"],
    }
    layers = []
    for lp in params["layers"]:
        layers.append({
            "wq": (lp["wq"] * scale).astype(BF16),
            "bq": lp["bq"] * scale,
            "wkv": jnp.concatenate([lp["wk"], lp["wv"]], axis=1).astype(BF16),
            "bkv": jnp.concatenate([lp["bk"], lp["bv"]], axis=1),
            "wo": lp["wo"].astype(BF16), "bo": lp["bo"],
            "ln1w": lp["ln1w"], "ln1b": lp["ln1b"],
            "w1": lp["w1"].astype(BF16), "b1": lp["b1"],
            "w2": lp["w2"].astype(BF16), "b2": lp["b2"],
            "ln2w": lp["ln2w"], "ln2b": lp["ln2b"],
        })
    prep["layers"] = layers
    return prep


# ----------------------------------------------------------------------------
# Full forward (glue in JAX, hot paths in Pallas kernels)
# ----------------------------------------------------------------------------
def forward(input_ids, prep):
    B, S = input_ids.shape
    V, D = prep["emb"].shape

    # embedding gather stays in glue (no clean BlockSpec gather form)
    embed = prep["emb"][input_ids]                          # (B, S, D)
    x = embed_proj(embed, prep["P_bf16"], prep["pe"][:S])
    # dropout after embedding: eval mode -> identity

    # additive causal bias, built once per forward and streamed per q-tile
    row = jax.lax.broadcasted_iota(jnp.int32, (S, S), 0)
    col = jax.lax.broadcasted_iota(jnp.int32, (S, S), 1)
    bias = jnp.where(row >= col, 0.0, NEG_INF).astype(F32)  # (S, S)

    for lp in prep["layers"]:
        x = transformer_block(x, bias, lp, prep["n_heads"])

    preds, pred2 = pred_head(x.reshape(B * S, D),
                             prep["final_ln_w"], prep["final_ln_b"],
                             prep["wout_bf16"], prep["bout"], prep["PT_bf16"])
    logits = logits_head(pred2, prep["emb_bf16"])
    return logits.reshape(B, S, V), preds.reshape(B, S, D)


if __name__ == "__main__":
    B, S = 2, 8
    vocab_size, d_model, n_heads, n_layers, d_ff, max_seq_len = 32, 32, 4, 2, 64, 16

    key = jax.random.PRNGKey(0)
    k_params, k_ids = jax.random.split(key)
    params = init_params(k_params, vocab_size, d_model, n_heads, n_layers,
                         d_ff, max_seq_len)
    prep = prepare_params(params)
    input_ids = jax.random.randint(k_ids, (B, S), 0, vocab_size, dtype=jnp.int32)

    logits, preds = forward(input_ids, prep)
    jax.block_until_ready((logits, preds))
    assert logits.shape == (B, S, vocab_size)
    assert preds.shape == (B, S, d_model)
    print("KERNEL_OK")
</pallas_src>

<mosaic_0001>
module attributes {stable_mosaic.version = 11 : i64} {
  func.func @_embed_kernel(%arg0: i32, %arg1: i32, %arg2: memref<1x8x32xf32, #tpu.memory_space<vmem>>, %arg3: memref<32x32xbf16, #tpu.memory_space<vmem>>, %arg4: memref<8x32xf32, #tpu.memory_space<vmem>>, %arg5: memref<1x8x32xf32, #tpu.memory_space<vmem>>) attributes {dimension_semantics = [#tpu.dimension_semantics<parallel>, #tpu.dimension_semantics<parallel>], iteration_bounds = array<i64: 2, 1>, scalar_prefetch = 0 : i64, scratch_operands = 0 : i64, tpu.core_type = #tpu.core_type<tc>, window_params = [{transform_indices = @transform_0, window_bounds = array<i64: 1, 8, 32>}, {pipeline_mode = #tpu.pipeline_mode<synchronous>, transform_indices = @transform_1, window_bounds = array<i64: 32, 32>}, {transform_indices = @transform_2, window_bounds = array<i64: 8, 32>}, {transform_indices = @transform_3, window_bounds = array<i64: 1, 8, 32>}]} {
    %c0 = arith.constant 0 : index
    %c0_0 = arith.constant 0 : index
    %c0_1 = arith.constant 0 : index
    %0 = vector.load %arg2[%c0, %c0_0, %c0_1] : memref<1x8x32xf32, #tpu.memory_space<vmem>>, vector<1x8x32xf32>
    %1 = vector.shape_cast %0 : vector<1x8x32xf32> to vector<8x32xf32>
    %2 = arith.truncf %1 : vector<8x32xf32> to vector<8x32xbf16>
    %c0_2 = arith.constant 0 : index
    %c0_3 = arith.constant 0 : index
    %3 = vector.load %arg3[%c0_2, %c0_3] : memref<32x32xbf16, #tpu.memory_space<vmem>>, vector<32x32xbf16>
    %cst = arith.constant dense<0.000000e+00> : vector<8x32xf32>
    %4 = tpu.matmul %2, %3, %cst {dimension_numbers = #tpu.dot_dimension_numbers<[1], [0], [0], [1], [0, 0, 1, 1], [], []>} : vector<8x32xbf16>, vector<32x32xbf16>, vector<8x32xf32> -> vector<8x32xf32>
    %c0_4 = arith.constant 0 : index
    %c0_5 = arith.constant 0 : index
    %5 = vector.load %arg4[%c0_4, %c0_5] : memref<8x32xf32, #tpu.memory_space<vmem>>, vector<8x32xf32>
    %6 = arith.addf %4, %5 : vector<8x32xf32>
    %c0_6 = arith.constant 0 : index
    %c0_7 = arith.constant 0 : index
    %c0_8 = arith.constant 0 : index
    %7 = vector.load %arg5[%c0_6, %c0_7, %c0_8] : memref<1x8x32xf32, #tpu.memory_space<vmem>>, vector<1x8x32xf32>
    %8 = vector.shape_cast %7 : vector<1x8x32xf32> to vector<8x32xf32>
    %9 = vector.shape_cast %6 : vector<8x32xf32> to vector<1x8x32xf32>
    tpu.vector_store %arg5[%c0_6, %c0_7, %c0_8], %9 {strides = array<i32>} : memref<1x8x32xf32, #tpu.memory_space<vmem>>, vector<1x8x32xf32>,
    return
  }
  func.func @transform_0(%arg0: i32, %arg1: i32) -> (i32, i32, i32) {
    %c0_i32 = arith.constant 0 : i32
    %c0_i32_0 = arith.constant 0 : i32
    return %arg0, %arg1, %c0_i32 : i32, i32, i32
  }
  func.func @transform_1(%arg0: i32, %arg1: i32) -> (i32, i32) {
    %c0_i32 = arith.constant 0 : i32
    %c0_i32_0 = arith.constant 0 : i32
    %c0_i32_1 = arith.constant 0 : i32
    return %c0_i32, %c0_i32_0 : i32, i32
  }
  func.func @transform_2(%arg0: i32, %arg1: i32) -> (i32, i32) {
    %c0_i32 = arith.constant 0 : i32
    %c0_i32_0 = arith.constant 0 : i32
    return %arg1, %c0_i32 : i32, i32
  }
  func.func @transform_3(%arg0: i32, %arg1: i32) -> (i32, i32, i32) {
    %c0_i32 = arith.constant 0 : i32
    %c0_i32_0 = arith.constant 0 : i32
    return %arg0, %arg1, %c0_i32 : i32, i32, i32
  }
}

</mosaic_0001>

<bundles_post_ra>
// kernel: tpu_custom_call.1
= control target key start
LH: loop header
LB: loop body
LE: loop exit
PB: predicated region body
PF: predicated region fallthrough
CT: control target
= control target key end

     0   :  { %8 = vsyncpa [#allocation3], 0  ;;  %s858_s0 = inlined_call_operand.hbm [shape: f32[2,8,32], index: 0, kind: input, shape index: {}]   ;;  %s859_s1 = inlined_call_operand.hbm [shape: bf16[32,32], index: 1, kind: input, shape index: {}]   ;;  %s860_s2 = inlined_call_operand.hbm [shape: f32[8,32], index: 2, kind: input, shape index: {}]   ;;  %s861_s3 = inlined_call_operand.hbm [shape: f32[2,8,32], index: 3, kind: output, shape index: {}]  }
   0x1   :  { %10 = vsyncpa [#allocation3 + $0x1], 0 }
   0x2   :  { %11 = vsyncpa [#allocation6], 0 }
   0x3   :  { %12 = vsyncpa [#allocation4], 0 }
   0x4   :  { %14 = vsyncpa [#allocation4 + $0x1], 0  ;;  %s714_s12 = smov 0   ;;  %s716_s13 = smov 0  }
   0x5   :  { %s718_s14 = smov 0   ;;  %s720_s15 = smov 0  }
   0x6   :  { %s722_s16 = smov 0   ;;  %s724_s17 = smov 0  }
   0x7 LB: > { %s399_s18 = sadd.s32 4294967295, %s688_s17   ;;  %p401_p0 = scmp.ge.s32.totalorder %s688_s17, 1  ;;  %s688_s17 = sphi %s724_s17, %s20_s17   ;;  %s684_s16 = sphi %s722_s16, %s871_s16   ;;  %s680_s15 = sphi %s720_s15, %s870_s15   ;;  %s676_s14 = sphi %s718_s14, %s869_s14   ;;  %s672_s13 = sphi %s716_s13, %s868_s13   ;;  %s668_s12 = sphi %s714_s12, %s867_s12  }
   0x8   : > { %p748_p1 = scmp.eq.s32.totalorder %s399_s18, 0  ;;  %p140_p2 = scmp.lt.s32.totalorder %s688_s17, 3 }
   0x9   : > { %s151_s22 = sshll.u32 %s859_s1, 4  ;;  %s690_s24 = smov [#allocation5]   ;;  %s152_s22 = int_to_ptr.hbm [resolvable:$true] %s151_s22 }
   0xa   : > { %p756_p3 = pnand %p401_p0, %p140_p2  ;;  %s153_s25 = sshll.u32 %s690_s24, 4  ;;  %s154_s25 = int_to_ptr.vmem [resolvable:$true] %s153_s25 }
   0xb   : > { %p404_p6 = scmp.ge.s32.totalorder %s688_s17, 2  ;;  %s168_s28 = sshll.u32 %s860_s2, 4  ;;  %s169_s28 = int_to_ptr.hbm [resolvable:$true] %s168_s28 }
   0xc   : > { %p439_p4 = pneg %p756_p3  ;;  %s691_s29 = smov 64  }
   0xd   : > { %s692_s30 = smov 4   ;;  %s693_s4 = smov [#allocation7]  }
   0xe   : > { %p440_p5 = pnand %p439_p4, %p748_p1  ;;  %s170_s5 = sshll.u32 %s693_s4, 4  ;;  %s171_s5 = int_to_ptr.vmem [resolvable:$true] %s170_s5 }
   0xf   : > { %s32_s6 = sadd.s32 1, %s684_s16  ;;  %s400_s7 = sadd.s32 4294967294, %s688_s17  }
  0x10   : > { %442 = dma.hbm_to_vmem [thread:$0]  (!%p440_p5), %s152_s22, 256, %s154_s25, [#allocation6], %s691_s29, %s691_s29, %s692_s30  }
  0x11   : > { %445 = dma.hbm_to_vmem [thread:$0]  (!%p440_p5), %s169_s28, 128, %s171_s5, [#allocation6]  }
  0x12   : > { %p34_p7 = scmp.ge.s32.totalorder %s32_s6, 2  ;;  %s41_s8 = sadd.s32 1, %s676_s14 }
  0x13   : > { %p48_p8 = scmp.ne.s32.totalorder %s676_s14, %s672_s13  ;;  %p49_p9 = scmp.eq.s32.totalorder %s688_s17, 0 }
  0x14   : > { %s873_s6 = smov (%p34_p7, %s32_s6), 0  ;;  %p54_p10 = scmp.ne.s32.totalorder %s672_s13, %s668_s12 }
  0x15   : > { %s36_s9 = ssub.s32 %s684_s16, %s873_s6  ;;  %p127_p11 = scmp.eq.s32.totalorder %s399_s18, 1 }
  0x16   : > { %p39_p12 = scmp.eq.s32.totalorder %s36_s9, 0  ;;  %p784_p13 = por %p748_p1, %p54_p10 }
  0x17   : > { %p788_p0 = por %p127_p11, %p48_p8  ;;  %p133_p2 = scmp.eq.s32.totalorder %s400_s7, 1 }
  0x18   : > { %s793_s20 = scalar_select %p39_p12, %s676_s14, %s41_s8  }
  0x19   : > { %p50_p4 = por %p49_p9, %p48_p8  ;;  %p795_p5 = por %p133_p2, %p54_p10 }
  0x1a   : > { %s181_s22 = sand.u32 1, %s676_s14   ;;  %s406_s18 = sshll.u32 %s684_s16, 3 }
  0x1b   : > { %p456_p7 = scmp.lt.s32.totalorder %s688_s17, 2  ;;  %s405_s24 = sshll.u32 %s181_s22, 3 }
  0x1c   : > { %s190_s27 = scalar_lea.hbm %s858_s0, %s406_s18  ;;  %s185_s29 = scalar_lea.vmem [#allocation2], %s405_s24 }
  0x1d   : > { %s192_s28 = sshll.u32 %s190_s27, 4  ;;  %s194_s30 = sshll.u32 %s185_s29, 4  ;;  %s193_s28 = int_to_ptr.hbm [resolvable:$true] %s192_s28  ;;  %s195_s30 = int_to_ptr.vmem [resolvable:$true] %s194_s30 }
  0x1e   : > { %p447_p11 = pnand %p456_p7, %p50_p4  ;;  %s182_s4 = scalar_lea.sflag [#allocation3], %s181_s22 }
  0x1f   : > { %203 = sbr.rel (%p756_p3) target bundleno = 181 (0xb5), region = 32  ;;  %s808_s5 = sand.u32 (!%p756_p3), 1, %s672_s13  }
  0x20   : > { %449 = dma.hbm_to_vmem [thread:$0]  (!%p447_p11), %s193_s28, 128, %s195_s30, %s182_s4  }
  0x21   : > { %s408_s7 = sshll.u32 (!%p756_p3), %s808_s5, 3  ;;  %s206_s8 = scalar_lea.sflag (!%p756_p3), [#allocation3], %s808_s5 }
  0x22   : > { %s209_s9 = scalar_lea.vmem (!%p756_p3), [#allocation2], %s408_s7 }
  0x24   : > { %655 = dma.done.wait (%p784_p13), %s206_s8, 128  }
  0x25   : > { %657 = vsyncadd (%p784_p13), %s206_s8, 4294967168 }
  0x26   : > { %659 = dma.done.wait (%p748_p1), [#allocation6], 384  }
  0x27   : > { %661 = vsyncadd (%p748_p1), [#allocation6], 4294966912  ;;  %v426_v0 = vld [vmem:[#allocation5 + $0x8] sm:$0xff]  ;;  %v425_v1 = vld [vmem:[#allocation5] sm:$0xff]  ;;  %vm263_vm0 = vcmask 261120   ;;  %s422_s23 = sshll.u32 %s680_s15, 3 }
  0x28   : > { %273 = vmatpush.bf16.msra.mxu0 %v426_v0  ;;  %v244_v2 = vld [vmem:[%s209_s9] sm:$0xff]  ;;  %s293_s18 = scalar_lea.hbm %s861_s3, %s422_s23  ;;  %s242_s24 = scalar_lea.vmem [#allocation8], %s408_s7 }
  0x29   : > { %v245_v3 = vpack.c.bf16 %v244_v2, %v244_v2  ;;  %v250_v4 = vld [vmem:[#allocation7] sm:$0xff]  ;;  %s295_s19 = sshll.u32 %s242_s24, 4  ;;  %s297_s25 = sshll.u32 %s293_s18, 4  ;;  %s296_s19 = int_to_ptr.vmem [resolvable:$true] %s295_s19  ;;  %s298_s25 = int_to_ptr.hbm [resolvable:$true] %s297_s25 }
  0x2a   : > { %s282_s26 = scalar_lea.sflag [#allocation4], %s808_s5  ;;  %s616_s27 = sshra.s32 %s298_s25, 4  ;;  %s617_s27 = int_to_ptr.hbm [resolvable:$true] %s616_s27 }
  0x2b   : > { %s618_s28 = scalar_lea.hbm %s617_s27, 8  ;;  %s622_s30 = scalar_lea.hbm %s861_s3, 16 }
  0x2c   : > { %274 = vmatpush.bf16.msra.mxu0 %v425_v1  ;;  %p619_p1 = scmp.ne.s32.totalorder %s617_s27, %s618_s28  ;;  %p623_p9 = scmp.lt.s32.totalorder %s617_s27, %s861_s3 }
  0x2d   : > { %p624_p10 = scmp.lt.s32.totalorder %s622_s30, %s618_s28 }
  0x2e   : > { %p620_p3 = pnand %p619_p1, %p788_p0 }
  0x2f   : > { %420 = vmatmul.msk.bf16.vlgmr.msra.gmra.mxu0 %vm263_vm0, %v245_v3  ;;  %p625_p12 = por %p624_p10, %p623_p9 }
  0x30   : > { %p621_p8 = pneg %p620_p3 }
  0x32   : > { %p626_p13 = pnand %p625_p12, %p621_p8 }
  0xac   : > { %v276_v5 = vpop.f32.mrf.mxu0 }
  0xad   : > { %v277_v6 = vadd.f32 %v276_v5, %v250_v4 }
  0xaf   : > { %280 = vst.msk [vmem:[%s242_s24] sm:$0xff] %vm263_vm0, %v277_v6 }
  0xb0   : > { %629 = shalt.err (!%p626_p13)
}
  0xb1   : > { %437 = dma.vmem_to_hbm [thread:$0]  (%p788_p0), %s296_s19, 128, %s298_s25, %s282_s26  }
  0xb4   : > { %v278_v7 = vpop.f32.mrf.mxu0 }
  0xb5 PF: > { %s309_s5 = sand.u32 1, %s668_s12   ;;  %p451_p2 = pnand %p404_p6, %p795_p5 }
  0xb6   : > { %s310_s8 = scalar_lea.sflag [#allocation4], %s309_s5 }
  0xb7   : > { %p452_p4 = pneg %p451_p2 }
  0xb9   : > { %663 = dma.done.wait (%p452_p4), %s310_s8, 128  }
  0xba   : > { %665 = vsyncadd (%p452_p4), %s310_s8, 4294967168  ;;  %s20_s17 = sadd.s32 1, %s688_s17   ;;  %s867_s12 = smov %s672_s13 }
  0xbb   : > { %p17_p7 = scmp.ge.s32.totalorder %s20_s17, 4   ;;  %s868_s13 = smov %s676_s14 }
  0xbc   : > { %s869_s14 = smov %s793_s20  ;;  %s870_s15 = smov %s684_s16 }
  0xbd   : > { %s871_s16 = smov %s873_s6  ;;  %19 = sbr.rel (!%p17_p7) target bundleno = 7 (0x7), region = 86 }
  0xc2   :  { %316 = vsyncpa [#allocation3], 1 }
  0xc3   :  { %318 = vsyncpa [#allocation3 + $0x1], 1 }
  0xc4   :  { %319 = vsyncpa [#allocation6], 1 }
  0xc5   :  { %320 = vsyncpa [#allocation4], 1 }
  0xc6   :  { %322 = vsyncpa [#allocation4 + $0x1], 1 }

</bundles_post_ra>
